<compile_context>
chip_gen: v6e
topology: v6e:2x2x1
jax: 0.10.0
libtpu: 0.0.40
codegen_flags: <defaults>
</compile_context>

<pallas_src>
import functools

import jax
import jax.numpy as jnp
import numpy as np
from jax.experimental import pallas as pl
from jax.experimental.pallas import tpu as pltpu

EPS = 1e-5

# ----------------------------------------------------------------------------
# lane-roll helper.  The rotate direction convention is probed once with a tiny
# one-off kernel so the math never depends on remembering it.
# ----------------------------------------------------------------------------
_ROLL_IS_NPROLL = None  # True -> pltpu.roll(x, s, ax)[i] == x[(i - s) % n]  (np.roll)


def _probe_roll_semantics():
    global _ROLL_IS_NPROLL
    if _ROLL_IS_NPROLL is None:
        def _k(x_ref, o_ref):
            o_ref[...] = pltpu.roll(x_ref[...], shift=1, axis=1)

        try:
            x = jax.lax.broadcasted_iota(jnp.float32, (8, 128), 1)
            out = pl.pallas_call(
                _k, out_shape=jax.ShapeDtypeStruct((8, 128), jnp.float32))(x)
            _ROLL_IS_NPROLL = float(jax.device_get(out)[0, 0]) == 127.0
        except Exception:  # e.g. called under a trace -> assume jnp.roll semantics
            _ROLL_IS_NPROLL = True
    return _ROLL_IS_NPROLL


def _roll_lanes(x, k, np_sem):
    """result[..., i] = x[..., (i + k) % L]  (pure lane rotation on the XLU)."""
    L = x.shape[-1]
    k = k % L
    if k == 0:
        return x
    shift = (L - k) % L if np_sem else k
    return pltpu.roll(x, shift=shift, axis=x.ndim - 1)


# ----------------------------------------------------------------------------
# in-kernel compute helpers (lane-dense (rows, Wp*C) f32 slabs, lane = w*C + c)
# ----------------------------------------------------------------------------
def _depthwise(xe_tall, dwv, cmid, np_sem):
    """9-tap depthwise MAC.  xe_tall has Hp+2 rows (2 zero rows top/bottom) and a
    1-column zero ring; the ring of the (Hp, L) result is junk and must be masked."""
    hp = xe_tall.shape[0] - 2
    acc = None
    for kh in range(3):
        row = xe_tall[kh:kh + hp, :]                       # static row slice
        for kw in range(3):
            tap = _roll_lanes(row, (kw - 1) * cmid, np_sem)  # shift along W inside lanes
            term = tap * dwv[kh * 3 + kw:kh * 3 + kw + 1, :]
            acc = term if acc is None else acc + term
    return acc


def _pointwise(act, pw_ref, cmid, nout, wp, use_roll, np_sem):
    """1x1 conv over channels on the lane-dense slab.  `act` has a zero ring, which
    becomes the pointwise conv's padding=1 border (the output ring is exactly 0)."""
    hp, _ = act.shape
    if use_roll:                      # CMID == NOUT: 2*G-1 roll+MAC terms, VPU + XLU only
        g = nout
        pwv = pw_ref[...]             # (2G-1, Wp*G)
        out = jnp.zeros_like(act)
        for si in range(2 * g - 1):
            s = si - (g - 1)                         # s = o - c
            t = _roll_lanes(act, -s, np_sem)         # t[w*G+o] = act[w*G + (o - s)]
            out = out + t * pwv[si:si + 1, :]
        return out
    # generic fallback (CMID != NOUT): relayout to channels-on-lanes + small matmul.
    flat = act.reshape(hp * wp, cmid)
    pw = jnp.dot(flat, pw_ref[...], preferred_element_type=jnp.float32)
    return pw.reshape(hp, wp * nout)


# ----------------------------------------------------------------------------
# kernels (grid = (N,), one batch element per grid step)
# ----------------------------------------------------------------------------
def _stats1_kernel(xe_ref, dww_ref, mask_ref, s_ref, ss_ref, *, cmid, np_sem):
    @pl.when(pl.program_id(0) == 0)
    def _():
        s_ref[...] = jnp.zeros_like(s_ref)
        ss_ref[...] = jnp.zeros_like(ss_ref)

    acc = _depthwise(xe_ref[...], dww_ref[...], cmid, np_sem) * mask_ref[...]
    s_ref[...] += jnp.sum(acc, axis=0, keepdims=True)
    ss_ref[...] += jnp.sum(acc * acc, axis=0, keepdims=True)


def _stats2_kernel(xe_ref, dww_ref, mask_ref, a1_ref, b1_ref, pw_ref,
                   s_ref, ss_ref, *, cmid, nout, wp, use_roll, np_sem):
    @pl.when(pl.program_id(0) == 0)
    def _():
        s_ref[...] = jnp.zeros_like(s_ref)
        ss_ref[...] = jnp.zeros_like(ss_ref)

    acc = _depthwise(xe_ref[...], dww_ref[...], cmid, np_sem)
    act = jnp.maximum(acc * a1_ref[...] + b1_ref[...], 0.0) * mask_ref[...]
    pw = _pointwise(act, pw_ref, cmid, nout, wp, use_roll, np_sem)
    s_ref[...] += jnp.sum(pw, axis=0, keepdims=True)
    ss_ref[...] += jnp.sum(pw * pw, axis=0, keepdims=True)


def _final_kernel(xe_ref, dww_ref, mask_ref, a1_ref, b1_ref, pw_ref, a2_ref,
                  b2_ref, out_ref, *, cmid, nout, wp, use_roll, np_sem):
    acc = _depthwise(xe_ref[...], dww_ref[...], cmid, np_sem)
    act = jnp.maximum(acc * a1_ref[...] + b1_ref[...], 0.0) * mask_ref[...]
    pw = _pointwise(act, pw_ref, cmid, nout, wp, use_roll, np_sem)
    out_ref[...] = jnp.maximum(pw * a2_ref[...] + b2_ref[...], 0.0)


# ----------------------------------------------------------------------------
# wrapper
# ----------------------------------------------------------------------------
def depthwise_separable_conv(x, dw_w, pw_w, g1, b1, g2, b2, *, kernels_per_layer):
    """x: (N, nin, H, W) NCHW.  Returns (N, nout, H+2, W+2) NCHW (the pointwise
    conv's padding=1 grows the spatial dims by 2, as in the PyTorch module)."""
    N, NIN, H, W = x.shape
    CMID = dw_w.shape[0]
    NOUT = pw_w.shape[0]
    assert CMID == NIN * kernels_per_layer
    Hp, Wp = H + 2, W + 2
    L1, L2 = Wp * CMID, Wp * NOUT
    f32 = jnp.float32
    np_sem = _probe_roll_semantics()
    use_roll = (CMID == NOUT)

    # ---- layout plumbing (XLA): NCHW -> lane-dense (N, Hp+2, Wp*CMID) slab with a
    # zero border (1 column ring + 2 zero rows top/bottom for the 3x3 row taps).
    x_nhwc = jnp.transpose(x.astype(f32), (0, 2, 3, 1))                  # (N,H,W,NIN)
    # TODO(synk): channel expansion (mid ch c <- in ch c//kpl) is still host-side and
    # costs kpl x extra input HBM bytes; doing it in-kernel needs a lane gather.
    xe = jnp.repeat(x_nhwc, kernels_per_layer, axis=-1)                  # (N,H,W,CMID)
    xe = jnp.pad(xe, ((0, 0), (2, 2), (1, 1), (0, 0)))                   # (N,H+4,Wp,CMID)
    xe = xe.reshape(N, H + 4, L1)

    # ---- constant per-lane weight / mask vectors (lane = w*C + c)
    dw_vecs = jnp.tile(jnp.transpose(dw_w.astype(f32).reshape(CMID, 9), (1, 0)),
                       (1, Wp))                                          # (9, Wp*CMID)
    mask = jnp.repeat(
        jnp.zeros((Hp, Wp), f32).at[1:H + 1, 1:W + 1].set(1.0), CMID, axis=1)

    pwm = pw_w.astype(f32)[:, :, 0, 0]                                   # (NOUT, CMID)
    if use_roll:
        G = NOUT
        o_idx = jnp.arange(G)
        rows = []
        for si in range(2 * G - 1):
            s = si - (G - 1)
            c_idx = o_idx - s
            rows.append(jnp.where((c_idx >= 0) & (c_idx < G),
                                  pwm[o_idx, jnp.clip(c_idx, 0, G - 1)], 0.0))
        pw_arg = jnp.tile(jnp.stack(rows, axis=0), (1, Wp))              # (2G-1, Wp*G)
    else:
        pw_arg = jnp.transpose(pwm, (1, 0))                              # (CMID, NOUT)

    xe_spec = pl.BlockSpec((None, H + 4, L1), lambda n: (n, 0, 0))

    def const_spec(shape):
        nd = len(shape)
        return pl.BlockSpec(shape, lambda n, nd=nd: (0,) * nd)

    def cparams(sem):
        return pltpu.CompilerParams(dimension_semantics=(sem,),
                                    vmem_limit_bytes=32 * 1024 * 1024)

    # ---- pass 1: depthwise conv, accumulate per-lane sum / sumsq for BN1 ----------
    s1, ss1 = pl.pallas_call(
        functools.partial(_stats1_kernel, cmid=CMID, np_sem=np_sem),
        out_shape=(jax.ShapeDtypeStruct((1, L1), f32),
                   jax.ShapeDtypeStruct((1, L1), f32)),
        grid=(N,),
        in_specs=[xe_spec, const_spec((9, L1)), const_spec((Hp, L1))],
        out_specs=(const_spec((1, L1)), const_spec((1, L1))),
        compiler_params=cparams("arbitrary"),
    )(xe, dw_vecs, mask)

    cnt1 = float(N * H * W)                     # BN1: interior (unpadded) grid only
    s1c = s1.reshape(Wp, CMID).sum(axis=0)
    ss1c = ss1.reshape(Wp, CMID).sum(axis=0)
    mean1 = s1c / cnt1
    var1 = jnp.maximum(ss1c / cnt1 - mean1 * mean1, 0.0)
    a1 = g1.astype(f32) * jax.lax.rsqrt(var1 + EPS)
    a1v = jnp.tile(a1, Wp).reshape(1, L1)
    b1v = jnp.tile(b1.astype(f32) - mean1 * a1, Wp).reshape(1, L1)

    # ---- pass 2: BN1+ReLU, pointwise, accumulate per-lane sum / sumsq for BN2 -----
    s2, ss2 = pl.pallas_call(
        functools.partial(_stats2_kernel, cmid=CMID, nout=NOUT, wp=Wp,
                          use_roll=use_roll, np_sem=np_sem),
        out_shape=(jax.ShapeDtypeStruct((1, L2), f32),
                   jax.ShapeDtypeStruct((1, L2), f32)),
        grid=(N,),
        in_specs=[xe_spec, const_spec((9, L1)), const_spec((Hp, L1)),
                  const_spec((1, L1)), const_spec((1, L1)),
                  const_spec(pw_arg.shape)],
        out_specs=(const_spec((1, L2)), const_spec((1, L2))),
        compiler_params=cparams("arbitrary"),
    )(xe, dw_vecs, mask, a1v, b1v, pw_arg)

    cnt2 = float(N * Hp * Wp)                   # BN2: padded grid, zero ring included
    s2c = s2.reshape(Wp, NOUT).sum(axis=0)
    ss2c = ss2.reshape(Wp, NOUT).sum(axis=0)
    mean2 = s2c / cnt2
    var2 = jnp.maximum(ss2c / cnt2 - mean2 * mean2, 0.0)
    a2 = g2.astype(f32) * jax.lax.rsqrt(var2 + EPS)
    a2v = jnp.tile(a2, Wp).reshape(1, L2)
    b2v = jnp.tile(b2.astype(f32) - mean2 * a2, Wp).reshape(1, L2)

    # ---- pass 3: normalize + write the lane-dense output (parallel over batch) ----
    out_flat = pl.pallas_call(
        functools.partial(_final_kernel, cmid=CMID, nout=NOUT, wp=Wp,
                          use_roll=use_roll, np_sem=np_sem),
        out_shape=jax.ShapeDtypeStruct((N, Hp, L2), f32),
        grid=(N,),
        in_specs=[xe_spec, const_spec((9, L1)), const_spec((Hp, L1)),
                  const_spec((1, L1)), const_spec((1, L1)),
                  const_spec(pw_arg.shape),
                  const_spec((1, L2)), const_spec((1, L2))],
        out_specs=pl.BlockSpec((None, Hp, L2), lambda n: (n, 0, 0)),
        compiler_params=cparams("parallel"),
    )(xe, dw_vecs, mask, a1v, b1v, pw_arg, a2v, b2v)

    out = out_flat.reshape(N, Hp, Wp, NOUT)
    return jnp.transpose(out, (0, 3, 1, 2))                              # back to NCHW


# ----------------------------------------------------------------------------
# pure-JAX reference mirroring the PyTorch forward (training-mode BN)
# ----------------------------------------------------------------------------
def reference(x, dw_w, pw_w, g1, b1, g2, b2, *, nin):
    dw = jax.lax.conv_general_dilated(
        x, dw_w, window_strides=(1, 1), padding=((1, 1), (1, 1)),
        dimension_numbers=('NCHW', 'OIHW', 'NCHW'),
        feature_group_count=nin, precision=jax.lax.Precision.HIGHEST)
    m = dw.mean(axis=(0, 2, 3), keepdims=True)
    v = ((dw - m) ** 2).mean(axis=(0, 2, 3), keepdims=True)
    dw = jnp.maximum((dw - m) / jnp.sqrt(v + EPS) * g1.reshape(1, -1, 1, 1)
                     + b1.reshape(1, -1, 1, 1), 0.0)
    pw = jax.lax.conv_general_dilated(
        dw, pw_w, window_strides=(1, 1), padding=((1, 1), (1, 1)),
        dimension_numbers=('NCHW', 'OIHW', 'NCHW'),
        precision=jax.lax.Precision.HIGHEST)
    m2 = pw.mean(axis=(0, 2, 3), keepdims=True)
    v2 = ((pw - m2) ** 2).mean(axis=(0, 2, 3), keepdims=True)
    return jnp.maximum((pw - m2) / jnp.sqrt(v2 + EPS) * g2.reshape(1, -1, 1, 1)
                       + b2.reshape(1, -1, 1, 1), 0.0)


if __name__ == "__main__":
    # module config: nin=4, kernels_per_layer=2, nout=8; H=W=14 so the padded grid is
    # 16x16 and the lane-dense slabs have a last dim of exactly 16*8 = 128 lanes.
    N, NIN, KPL, NOUT, H, W = 2, 4, 2, 8, 14, 14
    CMID = NIN * KPL

    key = jax.random.PRNGKey(0)
    k1, k2, k3, k4, k5, k6 = jax.random.split(key, 6)
    x = jax.random.normal(k1, (N, NIN, H, W), jnp.float32)
    dw_w = 0.3 * jax.random.normal(k2, (CMID, 1, 3, 3), jnp.float32)    # Conv2d(nin, nin*kpl, 3, groups=nin)
    pw_w = 0.3 * jax.random.normal(k3, (NOUT, CMID, 1, 1), jnp.float32)  # Conv2d(nin*kpl, nout, 1, padding=1)
    g1 = 1.0 + 0.1 * jax.random.normal(k4, (CMID,), jnp.float32)
    b1 = 0.1 * jax.random.normal(k5, (CMID,), jnp.float32)
    g2 = 1.0 + 0.1 * jax.random.normal(k6, (NOUT,), jnp.float32)
    b2 = jnp.zeros((NOUT,), jnp.float32)

    out = depthwise_separable_conv(x, dw_w, pw_w, g1, b1, g2, b2, kernels_per_layer=KPL)
    out = jax.block_until_ready(out)
    assert out.shape == (N, NOUT, H + 2, W + 2), out.shape

    ref = reference(x, dw_w, pw_w, g1, b1, g2, b2, nin=NIN)
    np.testing.assert_allclose(np.asarray(out), np.asarray(ref), rtol=2e-3, atol=2e-3)
    print("KERNEL_OK")
</pallas_src>

<mosaic_0001>
module attributes {stable_mosaic.version = 11 : i64} {
  func.func @_k(%arg0: memref<8x128xf32, #tpu.memory_space<vmem>>, %arg1: memref<8x128xf32, #tpu.memory_space<vmem>>) attributes {dimension_semantics = [], scalar_prefetch = 0 : i64, scratch_operands = 0 : i64, tpu.core_type = #tpu.core_type<tc>} {
    %c0 = arith.constant 0 : index
    %c0_0 = arith.constant 0 : index
    %0 = vector.load %arg0[%c0, %c0_0] : memref<8x128xf32, #tpu.memory_space<vmem>>, vector<8x128xf32>
    %c1_i32 = arith.constant 1 : i32
    %1 = tpu.dynamic_rotate %0 by %c1_i32 dim 1 : vector<8x128xf32>, i32 -> vector<8x128xf32>
    %c0_1 = arith.constant 0 : index
    %c0_2 = arith.constant 0 : index
    %2 = vector.load %arg1[%c0_1, %c0_2] : memref<8x128xf32, #tpu.memory_space<vmem>>, vector<8x128xf32>
    tpu.vector_store %arg1[%c0_1, %c0_2], %1 {strides = array<i32>} : memref<8x128xf32, #tpu.memory_space<vmem>>, vector<8x128xf32>,
    return
  }
}

module attributes {stable_mosaic.version = 11 : i64} {
  func.func @_stats1_kernel(%arg0: i32, %arg1: memref<1x18x128xf32, #tpu.memory_space<vmem>>, %arg2: memref<9x128xf32, #tpu.memory_space<vmem>>, %arg3: memref<16x128xf32, #tpu.memory_space<vmem>>, %arg4: memref<1x128xf32, #tpu.memory_space<vmem>>, %arg5: memref<1x128xf32, #tpu.memory_space<vmem>>) attributes {dimension_semantics = [#tpu.dimension_semantics<arbitrary>], iteration_bounds = array<i64: 2>, scalar_prefetch = 0 : i64, scratch_operands = 0 : i64, tpu.core_type = #tpu.core_type<tc>, window_params = [{transform_indices = @transform_0, window_bounds = array<i64: 1, 18, 128>}, {pipeline_mode = #tpu.pipeline_mode<synchronous>, transform_indices = @transform_1, window_bounds = array<i64: 9, 128>}, {pipeline_mode = #tpu.pipeline_mode<synchronous>, transform_indices = @transform_2, window_bounds = array<i64: 16, 128>}, {pipeline_mode = #tpu.pipeline_mode<synchronous>, transform_indices = @transform_3, window_bounds = array<i64: 1, 128>}, {pipeline_mode = #tpu.pipeline_mode<synchronous>, transform_indices = @transform_4, window_bounds = array<i64: 1, 128>}]} {
    %c0_i32 = arith.constant 0 : i32
    %0 = arith.cmpi eq, %arg0, %c0_i32 : i32
    %1 = arith.extui %0 : i1 to i32
    %c0_i32_0 = arith.constant 0 : i32
    %2 = arith.cmpi ne, %1, %c0_i32_0 : i32
    scf.if %2 {
      %cst_20 = arith.constant 0.000000e+00 : f32
      %63 = vector.broadcast %cst_20 : f32 to vector<1x128xf32>
      %c0_21 = arith.constant 0 : index
      %c0_22 = arith.constant 0 : index
      %64 = vector.load %arg4[%c0_21, %c0_22] : memref<1x128xf32, #tpu.memory_space<vmem>>, vector<1x128xf32>
      tpu.vector_store %arg4[%c0_21, %c0_22], %63 {strides = array<i32>} : memref<1x128xf32, #tpu.memory_space<vmem>>, vector<1x128xf32>,
      %cst_23 = arith.constant 0.000000e+00 : f32
      %65 = vector.broadcast %cst_23 : f32 to vector<1x128xf32>
      %c0_24 = arith.constant 0 : index
      %c0_25 = arith.constant 0 : index
      %66 = vector.load %arg5[%c0_24, %c0_25] : memref<1x128xf32, #tpu.memory_space<vmem>>, vector<1x128xf32>
      tpu.vector_store %arg5[%c0_24, %c0_25], %65 {strides = array<i32>} : memref<1x128xf32, #tpu.memory_space<vmem>>, vector<1x128xf32>,
    } else {
    }
    %c0 = arith.constant 0 : index
    %c0_1 = arith.constant 0 : index
    %c0_2 = arith.constant 0 : index
    %3 = vector.load %arg1[%c0, %c0_1, %c0_2] : memref<1x18x128xf32, #tpu.memory_space<vmem>>, vector<1x18x128xf32>
    %4 = vector.shape_cast %3 : vector<1x18x128xf32> to vector<18x128xf32>
    %c0_3 = arith.constant 0 : index
    %c0_4 = arith.constant 0 : index
    %5 = vector.load %arg2[%c0_3, %c0_4] : memref<9x128xf32, #tpu.memory_space<vmem>>, vector<9x128xf32>
    %6 = vector.extract_strided_slice %4 {offsets = [0, 0], sizes = [16, 128], strides = [1, 1]} : vector<18x128xf32> to vector<16x128xf32>
    %c8_i32 = arith.constant 8 : i32
    %7 = tpu.dynamic_rotate %6 by %c8_i32 dim 1 : vector<16x128xf32>, i32 -> vector<16x128xf32>
    %8 = vector.extract_strided_slice %5 {offsets = [0, 0], sizes = [1, 128], strides = [1, 1]} : vector<9x128xf32> to vector<1x128xf32>
    %9 = vector.broadcast %8 : vector<1x128xf32> to vector<16x128xf32>
    %10 = arith.mulf %7, %9 : vector<16x128xf32>
    %11 = vector.extract_strided_slice %5 {offsets = [1, 0], sizes = [1, 128], strides = [1, 1]} : vector<9x128xf32> to vector<1x128xf32>
    %12 = vector.broadcast %11 : vector<1x128xf32> to vector<16x128xf32>
    %13 = arith.mulf %6, %12 : vector<16x128xf32>
    %14 = arith.addf %10, %13 : vector<16x128xf32>
    %c120_i32 = arith.constant 120 : i32
    %15 = tpu.dynamic_rotate %6 by %c120_i32 dim 1 : vector<16x128xf32>, i32 -> vector<16x128xf32>
    %16 = vector.extract_strided_slice %5 {offsets = [2, 0], sizes = [1, 128], strides = [1, 1]} : vector<9x128xf32> to vector<1x128xf32>
    %17 = vector.broadcast %16 : vector<1x128xf32> to vector<16x128xf32>
    %18 = arith.mulf %15, %17 : vector<16x128xf32>
    %19 = arith.addf %14, %18 : vector<16x128xf32>
    %20 = vector.extract_strided_slice %4 {offsets = [1, 0], sizes = [16, 128], strides = [1, 1]} : vector<18x128xf32> to vector<16x128xf32>
    %c8_i32_5 = arith.constant 8 : i32
    %21 = tpu.dynamic_rotate %20 by %c8_i32_5 dim 1 : vector<16x128xf32>, i32 -> vector<16x128xf32>
    %22 = vector.extract_strided_slice %5 {offsets = [3, 0], sizes = [1, 128], strides = [1, 1]} : vector<9x128xf32> to vector<1x128xf32>
    %23 = vector.broadcast %22 : vector<1x128xf32> to vector<16x128xf32>
    %24 = arith.mulf %21, %23 : vector<16x128xf32>
    %25 = arith.addf %19, %24 : vector<16x128xf32>
    %26 = vector.extract_strided_slice %5 {offsets = [4, 0], sizes = [1, 128], strides = [1, 1]} : vector<9x128xf32> to vector<1x128xf32>
    %27 = vector.broadcast %26 : vector<1x128xf32> to vector<16x128xf32>
    %28 = arith.mulf %20, %27 : vector<16x128xf32>
    %29 = arith.addf %25, %28 : vector<16x128xf32>
    %c120_i32_6 = arith.constant 120 : i32
    %30 = tpu.dynamic_rotate %20 by %c120_i32_6 dim 1 : vector<16x128xf32>, i32 -> vector<16x128xf32>
    %31 = vector.extract_strided_slice %5 {offsets = [5, 0], sizes = [1, 128], strides = [1, 1]} : vector<9x128xf32> to vector<1x128xf32>
    %32 = vector.broadcast %31 : vector<1x128xf32> to vector<16x128xf32>
    %33 = arith.mulf %30, %32 : vector<16x128xf32>
    %34 = arith.addf %29, %33 : vector<16x128xf32>
    %35 = vector.extract_strided_slice %4 {offsets = [2, 0], sizes = [16, 128], strides = [1, 1]} : vector<18x128xf32> to vector<16x128xf32>
    %c8_i32_7 = arith.constant 8 : i32
    %36 = tpu.dynamic_rotate %35 by %c8_i32_7 dim 1 : vector<16x128xf32>, i32 -> vector<16x128xf32>
    %37 = vector.extract_strided_slice %5 {offsets = [6, 0], sizes = [1, 128], strides = [1, 1]} : vector<9x128xf32> to vector<1x128xf32>
    %38 = vector.broadcast %37 : vector<1x128xf32> to vector<16x128xf32>
    %39 = arith.mulf %36, %38 : vector<16x128xf32>
    %40 = arith.addf %34, %39 : vector<16x128xf32>
    %41 = vector.extract_strided_slice %5 {offsets = [7, 0], sizes = [1, 128], strides = [1, 1]} : vector<9x128xf32> to vector<1x128xf32>
    %42 = vector.broadcast %41 : vector<1x128xf32> to vector<16x128xf32>
    %43 = arith.mulf %35, %42 : vector<16x128xf32>
    %44 = arith.addf %40, %43 : vector<16x128xf32>
    %c120_i32_8 = arith.constant 120 : i32
    %45 = tpu.dynamic_rotate %35 by %c120_i32_8 dim 1 : vector<16x128xf32>, i32 -> vector<16x128xf32>
    %46 = vector.extract_strided_slice %5 {offsets = [8, 0], sizes = [1, 128], strides = [1, 1]} : vector<9x128xf32> to vector<1x128xf32>
    %47 = vector.broadcast %46 : vector<1x128xf32> to vector<16x128xf32>
    %48 = arith.mulf %45, %47 : vector<16x128xf32>
    %49 = arith.addf %44, %48 : vector<16x128xf32>
    %c0_9 = arith.constant 0 : index
    %c0_10 = arith.constant 0 : index
    %50 = vector.load %arg3[%c0_9, %c0_10] : memref<16x128xf32, #tpu.memory_space<vmem>>, vector<16x128xf32>
    %51 = arith.mulf %49, %50 : vector<16x128xf32>
    %c0_11 = arith.constant 0 : index
    %c0_12 = arith.constant 0 : index
    %52 = vector.load %arg4[%c0_11, %c0_12] : memref<1x128xf32, #tpu.memory_space<vmem>>, vector<1x128xf32>
    %cst = arith.constant dense<0.000000e+00> : vector<128xf32>
    %53 = vector.multi_reduction <add>, %51, %cst [0] : vector<16x128xf32> to vector<128xf32>
    %54 = vector.shape_cast %53 : vector<128xf32> to vector<1x128xf32>
    %55 = arith.addf %52, %54 : vector<1x128xf32>
    %c0_13 = arith.constant 0 : index
    %c0_14 = arith.constant 0 : index
    %56 = vector.load %arg4[%c0_13, %c0_14] : memref<1x128xf32, #tpu.memory_space<vmem>>, vector<1x128xf32>
    tpu.vector_store %arg4[%c0_13, %c0_14], %55 {strides = array<i32>} : memref<1x128xf32, #tpu.memory_space<vmem>>, vector<1x128xf32>,
    %c0_15 = arith.constant 0 : index
    %c0_16 = arith.constant 0 : index
    %57 = vector.load %arg5[%c0_15, %c0_16] : memref<1x128xf32, #tpu.memory_space<vmem>>, vector<1x128xf32>
    %58 = arith.mulf %51, %51 : vector<16x128xf32>
    %cst_17 = arith.constant dense<0.000000e+00> : vector<128xf32>
    %59 = vector.multi_reduction <add>, %58, %cst_17 [0] : vector<16x128xf32> to vector<128xf32>
    %60 = vector.shape_cast %59 : vector<128xf32> to vector<1x128xf32>
    %61 = arith.addf %57, %60 : vector<1x128xf32>
    %c0_18 = arith.constant 0 : index
    %c0_19 = arith.constant 0 : index
    %62 = vector.load %arg5[%c0_18, %c0_19] : memref<1x128xf32, #tpu.memory_space<vmem>>, vector<1x128xf32>
    tpu.vector_store %arg5[%c0_18, %c0_19], %61 {strides = array<i32>} : memref<1x128xf32, #tpu.memory_space<vmem>>, vector<1x128xf32>,
    return
  }
  func.func @transform_0(%arg0: i32) -> (i32, i32, i32) {
    %c0_i32 = arith.constant 0 : i32
    %c0_i32_0 = arith.constant 0 : i32
    %c0_i32_1 = arith.constant 0 : i32
    return %arg0, %c0_i32, %c0_i32_0 : i32, i32, i32
  }
  func.func @transform_1(%arg0: i32) -> (i32, i32) {
    %c0_i32 = arith.constant 0 : i32
    %c0_i32_0 = arith.constant 0 : i32
    %c0_i32_1 = arith.constant 0 : i32
    return %c0_i32, %c0_i32_0 : i32, i32
  }
  func.func @transform_2(%arg0: i32) -> (i32, i32) {
    %c0_i32 = arith.constant 0 : i32
    %c0_i32_0 = arith.constant 0 : i32
    %c0_i32_1 = arith.constant 0 : i32
    return %c0_i32, %c0_i32_0 : i32, i32
  }
  func.func @transform_3(%arg0: i32) -> (i32, i32) {
    %c0_i32 = arith.constant 0 : i32
    %c0_i32_0 = arith.constant 0 : i32
    %c0_i32_1 = arith.constant 0 : i32
    return %c0_i32, %c0_i32_0 : i32, i32
  }
  func.func @transform_4(%arg0: i32) -> (i32, i32) {
    %c0_i32 = arith.constant 0 : i32
    %c0_i32_0 = arith.constant 0 : i32
    %c0_i32_1 = arith.constant 0 : i32
    return %c0_i32, %c0_i32_0 : i32, i32
  }
}

</mosaic_0001>

<bundles_post_ra>
// kernel: tpu_custom_call.1
= control target key start
LH: loop header
LB: loop body
LE: loop exit
PB: predicated region body
PF: predicated region fallthrough
CT: control target
= control target key end

     0   :  { %6 = vsyncpa [#allocation3], 0  ;;  %s106_s0 = inlined_call_operand.hbm [shape: f32[8,128], index: 0, kind: input, shape index: {}]   ;;  %s107_s1 = inlined_call_operand.hbm [shape: f32[8,128], index: 1, kind: output, shape index: {}]  }
   0x1   :  { %7 = vsyncpa [#allocation4], 0  ;;  %s87_s6 = smov [#allocation2]  }
   0x2   :  { %s14_s7 = sshll.u32 %s87_s6, 4  ;;  %s15_s7 = int_to_ptr.vmem [resolvable:$true] %s14_s7 }
   0x3   :  { %s51_s8 = scalar_lea.vmem %s15_s7, 128  ;;  %p56_p1 = scmp.lt.s32.totalorder %s15_s7, %s15_s7 }
   0x4   :  { %p52_p0 = scmp.ne.s32.totalorder %s15_s7, %s51_s8  ;;  %p57_p2 = scmp.lt.s32.totalorder %s51_s8, %s51_s8 }
   0x6   :  { %p58_p3 = por %p57_p2, %p56_p1 }
   0x8   :  { %p59_p4 = pnand %p58_p3, %p52_p0 }
   0xa   :  { %62 = shalt.err (!%p59_p4)
}
   0xb   :  { %17 = dma.hbm_to_vmem [thread:$0]  %s106_s0, 128, %s15_s7, [#allocation3]  }
   0xc   :  { %83 = dma.done.wait [#allocation3], 128  }
   0xd   :  { %84 = vsyncadd [#allocation3], 4294967168  ;;  %v21_v0 = vld [vmem:[#allocation2] sm:$0xff]  ;;  %s88_s11 = smov 1   ;;  %s89_s12 = smov [#allocation5]  }
   0xe   :  { %22 = vrot.lane.b32.xlu0 %v21_v0, %s88_s11  ;;  %s31_s13 = sshll.u32 %s89_s12, 4  ;;  %s32_s13 = int_to_ptr.vmem [resolvable:$true] %s31_s13 }
   0xf   :  { %s63_s14 = scalar_lea.vmem %s32_s13, 128  ;;  %p68_p6 = scmp.lt.s32.totalorder %s32_s13, %s32_s13 }
  0x10   :  { %p64_p5 = scmp.ne.s32.totalorder %s32_s13, %s63_s14  ;;  %p69_p7 = scmp.lt.s32.totalorder %s63_s14, %s63_s14 }
  0x12   :  { %p70_p8 = por %p69_p7, %p68_p6 }
  0x14   :  { %p71_p9 = pnand %p70_p8, %p64_p5 }
  0x80   :  { %v23_v1 = vpop.permute.xlu0 %22 }
  0x81   :  { %24 = vst [vmem:[#allocation5] sm:$0xff] %v23_v1 }
  0x82   :  { %74 = shalt.err (!%p71_p9)
}
  0x83   :  { %34 = dma.vmem_to_hbm [thread:$0]  %s32_s13, 128, %s107_s1, [#allocation4]  }
  0x84   :  { %85 = dma.done.wait [#allocation4], 128  }
  0x85   :  { %86 = vsyncadd [#allocation4], 4294967168 }
  0x86   :  { %38 = vsyncpa [#allocation3], 1 }
  0x87   :  { %39 = vsyncpa [#allocation4], 1 }

// kernel: tpu_custom_call.1
= control target key start
LH: loop header
LB: loop body
LE: loop exit
PB: predicated region body
PF: predicated region fallthrough
CT: control target
= control target key end

     0   :  { %10 = vsyncpa [#allocation3], 0  ;;  %s650_s0 = inlined_call_operand.vmem [shape: f32[2,18,128], index: 0, kind: input, shape index: {}]   ;;  %s651_s1 = inlined_call_operand.vmem [shape: f32[9,128], index: 1, kind: input, shape index: {}]   ;;  %s652_s2 = inlined_call_operand.vmem [shape: f32[16,128], index: 2, kind: input, shape index: {}]   ;;  %s653_s3 = inlined_call_operand.hbm [shape: f32[1,128], index: 3, kind: output, shape index: {0}]   ;;  %s654_s4 = inlined_call_operand.hbm [shape: f32[1,128], index: 4, kind: output, shape index: {1}]  }
   0x1   :  { %11 = vsyncpa [#allocation5], 0  ;;  %s556_s15 = smov 0  }
   0x2 LB: > { %s562_s16 = sadd.s32 4294967295, %s524_s15   ;;  %p426_p0 = scmp.ge.s32.totalorder %s524_s15, 1  ;;  %s524_s15 = sphi %s556_s15, %s17_s15  }
   0x3   : > { %p157_p1 = scmp.lt.s32.totalorder %s524_s15, 3 }
   0x5   : > { %p158_p2 = pnand %p426_p0, %p157_p1 }
   0x6   : > { %p178_p3 = scmp.lt.s32.totalorder (!%p158_p2), %s562_s16, 1  ;;  %p428_p4 = scmp.ne.s32.totalorder (!%p158_p2), %s562_s16, 0 }
   0x7   : > { %161 = sbr.rel (%p158_p2) target bundleno = 196 (0xc4), region = 32 }
   0xc   : > { %s179_s17 = scalar_select %p178_p3, %s562_s16, 1 }
   0xd   : > { %186 = sbr.rel (%p428_p4) target bundleno = 20 (0x14), region = 36 }
   0xe   : > { %s436_s18 = smul.u32 24, %s179_s17 }
  0x10   : > { %s182_s21 = scalar_lea.vmem %s650_s0, %s436_s18 }
  0x12   : > { %v526_v0 = vmov 0.0  }
  0x13   : > { %187 = vst [vmem:[#allocation2] sm:$0x1] %v526_v0  ;;  %188 = vst [vmem:[#allocation4] sm:$0x1] %v526_v0 }
  0x14 PF: > { %v189_v1 = vld [vmem:[%s182_s21] sm:$0xff]  ;;  %v190_v2 = vld [vmem:[%s182_s21 + $0x8] sm:$0xff]  ;;  %v191_v3 = vld [vmem:[%s182_s21 + $0x10] sm:$0x3]  ;;  %v198_v4 = vlaneseq  ;;  %s527_s22 = smov 120   ;;  %s528_s23 = smov 8  }
  0x15   : > { %212 = vrot.lane.b32.xlu1 %v189_v1, %s527_s22  ;;  %194 = vrot.lane.b32.xlu0 %v189_v1, %s528_s23  ;;  %v229_v5 = vrot.slane %v190_v2, 1  ;;  %v231_v6 = vrot.slane %v191_v3, 1  ;;  %v228_v7 = vrot.slane %v189_v1, 1  ;;  %vm227_vm0 = vcmask 1046528   ;;  %v585_v13 = vld [vmem:[%s651_s1] sm:$0xff]  ;;  %s529_s6 = smov [#allocation2]  }
  0x16   : > { %v574_v8 = vshrl.u32 %v198_v4, 7  ;;  %v280_v16 = vrot.slane %v190_v2, 2  ;;  %v282_v17 = vrot.slane %v191_v3, 2  ;;  %v279_v18 = vrot.slane %v189_v1, 2  ;;  %s362_s7 = sshll.u32 %s529_s6, 4  ;;  %p445_p5 = scmp.eq.s32.totalorder %s562_s16, 1  ;;  %s363_s7 = int_to_ptr.vmem [resolvable:$true] %s362_s7 }
  0x17   : > { %v232_v9 = vsel %vm227_vm0, %v229_v5, %v231_v6  ;;  %v230_v10 = vsel %vm227_vm0, %v228_v7, %v229_v5  ;;  %vm278_vm1 = vcmask 1045504   ;;  %s530_s8 = smov [#allocation4]   ;;  %s462_s10 = scalar_lea.vmem %s363_s7, 16 }
  0x18   : > { %v249_v11 = vsub.s32 4, %v574_v8  ;;  %v300_v12 = vsub.s32 7, %v574_v8  ;;  %v283_v31 = vsel %vm278_vm1, %v280_v16, %v282_v17  ;;  %v281_v32 = vsel %vm278_vm1, %v279_v18, %v280_v16  ;;  %v429_v18 = vld [vmem:[%s651_s1 + $0x8] ss:$0 sm:$0xff]  ;;  %s373_s9 = sshll.u32 %s530_s8, 4  ;;  %p463_p6 = scmp.ne.s32.totalorder %s363_s7, %s462_s10  ;;  %s374_s9 = int_to_ptr.vmem [resolvable:$true] %s373_s9 }
  0x19   : > { %214 = vrot.lane.b32.xlu1 %v190_v2, %s527_s22  ;;  %196 = vrot.lane.b32.xlu0 %v190_v2, %s528_s23  ;;  %v200_v37 = vsub.s32 0, %v574_v8  ;;  %v206_v38 = vsub.s32 1, %v574_v8  ;;  %v218_v41 = vsub.s32 2, %v574_v8  ;;  %v241_v46 = vsub.s32 3, %v574_v8  ;;  %s468_s11 = scalar_lea.vmem %s363_s7, 32  ;;  %p469_p9 = scmp.lt.s32.totalorder %s363_s7, %s363_s7 }
  0x1a   : > { %v250_v14 = vrot.slane %v585_v13, %v249_v11  ;;  %v301_v15 = vrot.slane %v585_v13, %v300_v12  ;;  %v272_v51 = vsub.s32 5, %v574_v8  ;;  %v292_v61 = vsub.s32 6, %v574_v8  ;;  %p464_p7 = pnand %p463_p6, %p445_p5  ;;  %p470_p10 = scmp.lt.s32.totalorder %s468_s11, %s462_s10 }
  0x1b   : > { %v201_v39 = vrot.slane %v585_v13, %v200_v37  ;;  %v207_v40 = vrot.slane %v585_v13, %v206_v38  ;;  %v219_v47 = vrot.slane %v585_v13, %v218_v41  ;;  %v242_v54 = vrot.slane %v585_v13, %v241_v46 }
  0x1c   : > { %v252_v19 = vmul.f32 %v250_v14, %v190_v2  ;;  %v253_v20 = vmul.f32 %v250_v14, %v191_v3  ;;  %v251_v21 = vmul.f32 %v250_v14, %v189_v1  ;;  %v303_v22 = vmul.f32 %v301_v15, %v190_v2  ;;  %p465_p8 = pneg %p464_p7  ;;  %p471_p11 = por %p470_p10, %p469_p9 }
  0x1d   : > { %237 = vrot.lane.b32.xlu1 %v232_v9, %s528_s23  ;;  %235 = vrot.lane.b32.xlu0 %v230_v10, %s528_s23  ;;  %v304_v23 = vmul.f32 %v301_v15, %v191_v3  ;;  %v302_v24 = vmul.f32 %v301_v15, %v189_v1  ;;  %v208_v45 = vmul.f32 %v207_v40, %v189_v1 }
  0x1e   : > { %v258_v25 = vrot.slane %v252_v19, 1  ;;  %v260_v26 = vrot.slane %v253_v20, 1  ;;  %v257_v27 = vrot.slane %v251_v21, 1  ;;  %v309_v28 = vrot.slane %v303_v22, 2  ;;  %p472_p12 = pnand %p471_p11, %p465_p8 }
  0x1f   : > { %v311_v29 = vrot.slane %v304_v23, 2  ;;  %v308_v30 = vrot.slane %v302_v24, 2  ;;  %v209_v48 = vmul.f32 %v207_v40, %v190_v2  ;;  %v273_v60 = vrot.slane %v585_v13, %v272_v51 }
  0x20   : > { %v261_v33 = vsel %vm227_vm0, %v258_v25, %v260_v26  ;;  %v259_v34 = vsel %vm227_vm0, %v257_v27, %v258_v25  ;;  %v293_v6 = vrot.slane %v585_v13, %v292_v61  ;;  %v330_v26 = vld [vmem:[%s652_s2 + $0x8] sm:$0xff]  ;;  %v329_v27 = vld [vmem:[%s652_s2] sm:$0xff] }
  0x21   : > { %268 = vrot.lane.b32.xlu1 %v232_v9, %s527_s22  ;;  %266 = vrot.lane.b32.xlu0 %v230_v10, %s527_s22  ;;  %v312_v35 = vsel %vm278_vm1, %v309_v28, %v311_v29  ;;  %v310_v36 = vsel %vm278_vm1, %v308_v30, %v309_v28 }
  0x25   : > { %288 = vrot.lane.b32.xlu1 %v283_v31, %s528_s23  ;;  %286 = vrot.lane.b32.xlu0 %v281_v32, %s528_s23 }
  0x29   : > { %319 = vrot.lane.b32.xlu1 %v283_v31, %s527_s22  ;;  %317 = vrot.lane.b32.xlu0 %v281_v32, %s527_s22 }
  0x87   : > { %v213_v42 = vpop.permute.xlu1 %212  ;;  %v195_v43 = vpop.permute.xlu0 %194 }
  0x88   : > { %v202_v44 = vmul.f32 %v201_v39, %v195_v43  ;;  %v220_v55 = vmul.f32 %v219_v47, %v213_v42 }
  0x8a   : > { %v210_v52 = vadd.f32 %v208_v45, %v202_v44  ;;  %v333_v45 = vld [vmem:[#allocation2] sm:$0x1] }
  0x8b   : > { %v215_v49 = vpop.permute.xlu1 %214  ;;  %v197_v50 = vpop.permute.xlu0 %196 }
  0x8c   : > { %v203_v53 = vmul.f32 %v201_v39, %v197_v50  ;;  %v221_v56 = vmul.f32 %v219_v47, %v215_v49  ;;  %v222_v0 = vadd.f32 %v220_v55, %v210_v52 }
  0x8e   : > { %v211_v57 = vadd.f32 %v209_v48, %v203_v53  ;;  %v343_v48 = vld [vmem:[#allocation4] sm:$0x1] }
  0x8f   : > { %v238_v58 = vpop.permute.xlu1 %237  ;;  %v236_v59 = vpop.permute.xlu0 %235 }
  0x90   : > { %v223_v62 = vadd.f32 %v221_v56, %v211_v57  ;;  %v244_v63 = vmul.f32 %v242_v54, %v238_v58  ;;  %v243_v1 = vmul.f32 %v242_v54, %v236_v59 }
  0x92   : > { %v246_v2 = vadd.f32 %v244_v63, %v223_v62  ;;  %v245_v3 = vadd.f32 %v243_v1, %v222_v0 }
  0x93   : > { %v269_v4 = vpop.permute.xlu1 %268  ;;  %v267_v5 = vpop.permute.xlu0 %266 }
  0x94   : > { %v265_v7 = vadd.f32 %v261_v33, %v246_v2  ;;  %v275_v9 = vmul.f32 %v273_v60, %v269_v4  ;;  %v264_v10 = vadd.f32 %v259_v34, %v245_v3  ;;  %v274_v11 = vmul.f32 %v273_v60, %v267_v5 }
  0x96   : > { %v277_v15 = vadd.f32 %v275_v9, %v265_v7  ;;  %v276_v16 = vadd.f32 %v274_v11, %v264_v10 }
  0x97   : > { %v289_v12 = vpop.permute.xlu1 %288  ;;  %v287_v14 = vpop.permute.xlu0 %286 }
  0x98   : > { %v295_v17 = vmul.f32 %v293_v6, %v289_v12  ;;  %v294_v8 = vmul.f32 %v293_v6, %v287_v14 }
  0x9a   : > { %v297_v19 = vadd.f32 %v295_v17, %v277_v15  ;;  %v296_v20 = vadd.f32 %v294_v8, %v276_v16 }
  0x9b   : > { %v320_v21 = vpop.permute.xlu1 %319  ;;  %v318_v22 = vpop.permute.xlu0 %317 }
  0x9c   : > { %v316_v23 = vadd.f32 %v312_v35, %v297_v19  ;;  %v326_v13 = vmul.f32 %v429_v18, %v320_v21  ;;  %v315_v24 = vadd.f32 %v310_v36, %v296_v20  ;;  %v325_v25 = vmul.f32 %v429_v18, %v318_v22 }
  0x9e   : > { %v328_v28 = vadd.f32 %v326_v13, %v316_v23  ;;  %v327_v29 = vadd.f32 %v325_v25, %v315_v24 }
  0xa0   : > { %v332_v30 = vmul.f32 %v330_v26, %v328_v28  ;;  %v331_v31 = vmul.f32 %v329_v27, %v327_v29 }
  0xa2   : > { %v345_v32 = vmul.f32 %v332_v30, %v332_v30  ;;  %v334_v33 = vadd.f32 %v332_v30, %v331_v31  ;;  %v344_v34 = vmul.f32 %v331_v31, %v331_v31 }
  0xa4   : > { %v335_v35 = vrot.slane %v334_v33, 4  ;;  %v346_v37 = vadd.f32 %v345_v32, %v344_v34 }
  0xa6   : > { %v336_v36 = vadd.f32 %v335_v35, %v334_v33  ;;  %v347_v38 = vrot.slane %v346_v37, 4 }
  0xa8   : > { %v337_v39 = vrot.slane %v336_v36, 2  ;;  %v348_v40 = vadd.f32 %v347_v38, %v346_v37 }
  0xaa   : > { %v338_v41 = vadd.f32 %v337_v39, %v336_v36  ;;  %v349_v42 = vrot.slane %v348_v40, 2 }
  0xac   : > { %v339_v43 = vrot.slane %v338_v41, 1  ;;  %v350_v44 = vadd.f32 %v349_v42, %v348_v40 }
  0xae   : > { %v340_v46 = vadd.f32 %v339_v43, %v338_v41  ;;  %v351_v47 = vrot.slane %v350_v44, 1 }
  0xb0   : > { %v341_v49 = vadd.f32 %v340_v46, %v333_v45  ;;  %v352_v50 = vadd.f32 %v351_v47, %v350_v44 }
  0xb2   : > { %342 = vst [vmem:[#allocation2] sm:$0x1] %v341_v49  ;;  %v353_v51 = vadd.f32 %v352_v50, %v343_v48 }
  0xb3   : > { %475 = shalt.err (!%p472_p12)
}
  0xb4   : > { %438 = dma.vmem_to_hbm [thread:$0]  (%p445_p5), %s363_s7, 16, %s653_s3, [#allocation3]   ;;  %354 = vst [vmem:[#allocation4] sm:$0x1] %v353_v51 }
  0xb5   : > { %s486_s14 = scalar_lea.vmem %s374_s9, 16  ;;  %s492_s17 = scalar_lea.vmem %s374_s9, 32 }
  0xb6   : > { %p487_p13 = scmp.ne.s32.totalorder %s374_s9, %s486_s14  ;;  %p493_p2 = scmp.lt.s32.totalorder %s374_s9, %s374_s9 }
  0xb7   : > { %p494_p3 = scmp.lt.s32.totalorder %s492_s17, %s486_s14 }
  0xb8   : > { %p488_p0 = pnand %p487_p13, %p445_p5 }
  0xb9   : > { %p495_p4 = por %p494_p3, %p493_p2 }
  0xba   : > { %p489_p1 = pneg %p488_p0 }
  0xbc   : > { %p496_p6 = pnand %p495_p4, %p489_p1 }
  0xbe   : > { %499 = shalt.err (!%p496_p6)
}
  0xbf   : > { %440 = dma.vmem_to_hbm [thread:$0]  (%p445_p5), %s374_s9, 16, %s654_s4, [#allocation5]  }
  0xc0   : > { %515 = dma.done.wait (%p445_p5), [#allocation3], 16  }
  0xc1   : > { %517 = vsyncadd (%p445_p5), [#allocation3], 4294967280 }
  0xc2   : > { %519 = dma.done.wait (%p445_p5), [#allocation5], 16  }
  0xc3   : > { %521 = vsyncadd (%p445_p5), [#allocation5], 4294967280 }
  0xc4 PF: > { %s17_s15 = sadd.s32 1, %s524_s15  }
  0xc5   : > { %p14_p7 = scmp.ge.s32.totalorder %s17_s15, 4  }
  0xc7   :  { %16 = sbr.rel (!%p14_p7) target bundleno = 2 (0x2), region = 71 }
  0xcc   :  { %390 = vsyncpa [#allocation3], 1 }
  0xcd   :  { %392 = vsyncpa [#allocation3 + $0x1], 1 }
  0xce   :  { %393 = vsyncpa [#allocation5], 1 }

</bundles_post_ra>
